<compile_context>
chip_gen: v7x
topology: tpu7x:2x2x1
jax: 0.10.0
libtpu: 0.0.40
codegen_flags: <defaults>
</compile_context>

<pallas_src>
import functools

import jax
import jax.numpy as jnp
from jax.experimental import pallas as pl
from jax.experimental.pallas import tpu as pltpu

EPS = 1e-5
_LANE = 128


def _round_up(x, m):
    return ((x + m - 1) // m) * m


def _pad_to_lane(c, max_waste=1.25):
    """Pad a channel count to a lane multiple only if the waste is small."""
    cp = _round_up(c, _LANE)
    if c % _LANE != 0 and cp <= c * max_waste:
        return cp
    return c


def _vmem_capacity_bytes():
    """Physical VMEM bytes (128 MiB on v5e/v6e, 64 MiB per core on v7x)."""
    try:
        info = pltpu.get_tpu_info()
        cap = getattr(info, "vmem_capacity_bytes", None)
        if cap:
            return int(cap)
    except Exception:
        pass
    return 128 * 1024 * 1024


def _pick_tile_h(N, H, W, C_in, C_out_p, in_itemsize, out_itemsize,
                 budget_bytes, min_grid_steps):
    """Pick tile_h: largest even divisor of H whose full per-step footprint fits
    the budget, preferring (a) enough grid steps for megacore, (b) matmul
    M = (tile_h/2)*(W/2) >= 512."""
    Wo = W // 2
    cands = [th for th in range(2, H + 1, 2) if H % th == 0]

    def footprint(th):
        tho = th // 2
        inp = 2 * th * W * C_in * in_itemsize            # double-buffered input
        out = 2 * tho * Wo * C_out_p * out_itemsize      # double-buffered output
        tmp = 4 * th * Wo * C_in * 4                     # f32 temporaries
        res = 2 * (2 * C_in * 4 + C_in * C_out_p * in_itemsize)  # ss + weight
        return inp + out + tmp + res

    fits = [th for th in cands if footprint(th) <= budget_bytes] or cands[:1]
    return max(fits, key=lambda th: (N * (H // th) >= min_grid_steps,
                                     (th // 2) * Wo >= 512,
                                     th))


def _transition_kernel(x_ref, ss_ref, w_ref, o_ref):
    # x_ref : (TILE_H, W, C_in_p)          NHWC activation tile
    # ss_ref: (2, C_in_p)                  row 0 = BN scale, row 1 = BN shift (f32)
    # w_ref : (C_in_p, C_out_p)            1x1 conv weight * 0.25 (pool folded)
    # o_ref : (TILE_H//2, W//2, C_out_p)
    tho, wo, _ = o_ref.shape
    c_in = x_ref.shape[-1]

    # Hoisted broadcasts, reused for both column halves (JAX does not CSE them).
    sc = ss_ref[0, :][None, None, :]                      # (1, 1, C_in)
    sh = ss_ref[1, :][None, None, :]

    # Even / odd W columns via strided (sublane) ref loads.
    x_even = x_ref[:, pl.ds(0, wo, stride=2), :].astype(jnp.float32)
    x_odd = x_ref[:, pl.ds(1, wo, stride=2), :].astype(jnp.float32)

    # BN (eval) + ReLU is elementwise, so per-column-group application is exact;
    # sum the pair -> W-pooled activation.
    wsum = (jnp.maximum(x_even * sc + sh, 0.0)
            + jnp.maximum(x_odd * sc + sh, 0.0))          # (TILE_H, W//2, C_in)

    # H-pool: regroup the untiled major axis (last two dims untouched -> free).
    wsum = wsum.reshape(tho, 2, wo, c_in)
    pooled = wsum[:, 0, :, :] + wsum[:, 1, :, :]          # (TILE_H//2, W//2, C_in)

    # 1x1 conv == channel matmul on the MXU (pool happened first: 4x fewer FLOPs).
    p2 = pooled.reshape(tho * wo, c_in).astype(w_ref.dtype)
    y = jnp.dot(p2, w_ref[...], preferred_element_type=jnp.float32)
    o_ref[...] = y.reshape(tho, wo, -1).astype(o_ref.dtype)


@functools.partial(jax.jit, static_argnames=("tile_h",))
def transition_block_nhwc(x, gamma, beta, running_mean, running_var,
                          conv_w_oihw, tile_h=None):
    """NHWC-native forward pass (preferred: no layout transposes).

    x:           (N, H, W, C_in)
    conv_w_oihw: (C_out, C_in, 1, 1)   -- PyTorch Conv2d weight
    returns:     (N, H//2, W//2, C_out)
    """
    N, H, W, C_in = x.shape
    C_out = conv_w_oihw.shape[0]
    assert H % 2 == 0 and W % 2 == 0, "F.avg_pool2d(x, 2) requires even H and W"
    Ho, Wo = H // 2, W // 2

    C_in_p = _pad_to_lane(C_in)
    C_out_p = _pad_to_lane(C_out)

    # Precompute BN (eval) scale/shift once, in f32.
    scale = gamma.astype(jnp.float32) * jax.lax.rsqrt(
        running_var.astype(jnp.float32) + EPS)
    shift = beta.astype(jnp.float32) - running_mean.astype(jnp.float32) * scale
    if C_in_p != C_in:
        scale = jnp.pad(scale, (0, C_in_p - C_in))
        shift = jnp.pad(shift, (0, C_in_p - C_in))
        x = jnp.pad(x, ((0, 0), (0, 0), (0, 0), (0, C_in_p - C_in)))
    ss = jnp.stack([scale, shift], axis=0)                        # (2, C_in_p)

    # 1x1 conv weight: OIHW -> (C_in, C_out); fold 0.25 pool scale; pad.
    w = jnp.transpose(conv_w_oihw[:, :, 0, 0], (1, 0)).astype(x.dtype) * 0.25
    w = jnp.pad(w, ((0, C_in_p - C_in), (0, C_out_p - C_out)))

    vmem_cap = _vmem_capacity_bytes()
    if tile_h is None:
        tile_h = _pick_tile_h(
            N, H, W, C_in_p, C_out_p,
            x.dtype.itemsize, x.dtype.itemsize,
            budget_bytes=vmem_cap // 4,
            # On 64-MiB parts (v7x) there are 2 TensorCores: keep >= 8 steps so
            # both get work; on 128-MiB parts a couple of big steps is fine.
            min_grid_steps=8 if vmem_cap <= 64 * 1024 * 1024 else 2)
    assert tile_h % 2 == 0 and H % tile_h == 0, (tile_h, H)
    tho = tile_h // 2
    grid = (N, H // tile_h)

    vmem_limit = int(min(max(vmem_cap * 3 // 4, 32 * 1024 * 1024),
                         100 * 1024 * 1024))

    cost = pl.CostEstimate(
        flops=2 * N * Ho * Wo * C_in_p * C_out_p,
        transcendentals=0,
        bytes_accessed=int(N * H * W * C_in_p * x.dtype.itemsize
                           + N * Ho * Wo * C_out_p * x.dtype.itemsize
                           + C_in_p * C_out_p * w.dtype.itemsize),
    )

    out_nhwc = pl.pallas_call(
        _transition_kernel,
        out_shape=jax.ShapeDtypeStruct((N, Ho, Wo, C_out_p), x.dtype),
        grid_spec=pltpu.PrefetchScalarGridSpec(
            num_scalar_prefetch=0,
            grid=grid,
            in_specs=[
                pl.BlockSpec((None, tile_h, W, C_in_p),
                             lambda n, h: (n, h, 0, 0)),
                pl.BlockSpec((2, C_in_p), lambda n, h: (0, 0)),        # resident
                pl.BlockSpec((C_in_p, C_out_p), lambda n, h: (0, 0)),  # resident
            ],
            out_specs=pl.BlockSpec((None, tho, Wo, C_out_p),
                                   lambda n, h: (n, h, 0, 0)),
        ),
        compiler_params=pltpu.CompilerParams(
            dimension_semantics=("parallel", "parallel"),
            vmem_limit_bytes=vmem_limit),
        cost_estimate=cost,
    )(x, ss, w)

    if C_out_p != C_out:
        out_nhwc = out_nhwc[..., :C_out]
    return out_nhwc


@functools.partial(jax.jit, static_argnames=("tile_h",))
def transition_block(x_nchw, gamma, beta, running_mean, running_var,
                     conv_w_oihw, tile_h=None):
    """PyTorch-layout forward pass of TransitionBlock (droprate == 0).

    x_nchw:      (N, C_in, H, W)
    conv_w_oihw: (C_out, C_in, 1, 1)
    returns:     (N, C_out, H//2, W//2)

    Note: the NCHW<->NHWC transposes below are pure layout glue and roughly
    double total HBM traffic for this memory-bound op; prefer
    `transition_block_nhwc` when the surrounding network can stay NHWC.
    """
    x = jnp.transpose(x_nchw, (0, 2, 3, 1))                       # (N, H, W, C_in)
    out = transition_block_nhwc(x, gamma, beta, running_mean, running_var,
                                conv_w_oihw, tile_h=tile_h)
    return jnp.transpose(out, (0, 3, 1, 2))                       # NHWC -> NCHW


def _reference(x_nchw, gamma, beta, running_mean, running_var, conv_w_oihw):
    """Pure-JAX reference (eval-mode BN, ReLU, 1x1 conv, avgpool 2)."""
    x = x_nchw.astype(jnp.float32)
    scale = gamma / jnp.sqrt(running_var + EPS)
    shift = beta - running_mean * scale
    xn = x * scale[None, :, None, None] + shift[None, :, None, None]
    xr = jnp.maximum(xn, 0.0)
    w = conv_w_oihw[:, :, 0, 0]                                   # (C_out, C_in)
    y = jnp.einsum("nchw,oc->nohw", xr, w)
    N, Co, H, W = y.shape
    y = y.reshape(N, Co, H // 2, 2, W // 2, 2).mean(axis=(3, 5))
    return y


if __name__ == "__main__":
    key = jax.random.PRNGKey(0)
    k1, k2, k3, k4, k5 = jax.random.split(key, 5)

    N, C_in, C_out, H, W = 2, 8, 4, 16, 16

    x = jax.random.normal(k1, (N, C_in, H, W), dtype=jnp.float32)
    gamma = jax.random.normal(k2, (C_in,), dtype=jnp.float32) * 0.1 + 1.0
    beta = jax.random.normal(k3, (C_in,), dtype=jnp.float32) * 0.1
    running_mean = jax.random.normal(k4, (C_in,), dtype=jnp.float32) * 0.1
    running_var = jnp.abs(jax.random.normal(k5, (C_in,), dtype=jnp.float32)) * 0.1 + 1.0
    conv_w = jax.random.normal(jax.random.PRNGKey(42), (C_out, C_in, 1, 1),
                               dtype=jnp.float32) * 0.1

    ref = _reference(x, gamma, beta, running_mean, running_var, conv_w)

    # 1) PyTorch-layout wrapper, auto tile selection.
    out = transition_block(x, gamma, beta, running_mean, running_var, conv_w)
    out = jax.block_until_ready(out)
    assert out.shape == (N, C_out, H // 2, W // 2), out.shape
    assert jnp.allclose(out, ref, atol=1e-4, rtol=1e-4), \
        float(jnp.max(jnp.abs(out - ref)))

    # 2) Whole-image tile (single H step per image) through the same kernel.
    out_t = transition_block(x, gamma, beta, running_mean, running_var, conv_w,
                             tile_h=16)
    out_t = jax.block_until_ready(out_t)
    assert jnp.allclose(out_t, ref, atol=1e-4, rtol=1e-4), \
        float(jnp.max(jnp.abs(out_t - ref)))

    # 3) NHWC-native entry point (no layout transposes around the kernel).
    x_nhwc = jnp.transpose(x, (0, 2, 3, 1))
    out_nhwc = transition_block_nhwc(x_nhwc, gamma, beta, running_mean,
                                     running_var, conv_w)
    out_nhwc = jax.block_until_ready(out_nhwc)
    assert out_nhwc.shape == (N, H // 2, W // 2, C_out), out_nhwc.shape
    assert jnp.allclose(jnp.transpose(out_nhwc, (0, 3, 1, 2)), ref,
                        atol=1e-4, rtol=1e-4), \
        float(jnp.max(jnp.abs(jnp.transpose(out_nhwc, (0, 3, 1, 2)) - ref)))

    print("KERNEL_OK")
</pallas_src>

<mosaic_0001>
module attributes {stable_mosaic.version = 11 : i64} {
  func.func @_transition_kernel(%arg0: i32, %arg1: i32, %arg2: memref<1x16x16x8xf32, #tpu.memory_space<vmem>>, %arg3: memref<2x8xf32, #tpu.memory_space<vmem>>, %arg4: memref<8x4xf32, #tpu.memory_space<vmem>>, %arg5: memref<1x8x8x4xf32, #tpu.memory_space<vmem>>) attributes {dimension_semantics = [#tpu.dimension_semantics<parallel>, #tpu.dimension_semantics<parallel>], iteration_bounds = array<i64: 2, 1>, scalar_prefetch = 0 : i64, scratch_operands = 0 : i64, tpu.core_type = #tpu.core_type<tc>, window_params = [{transform_indices = @transform_0, window_bounds = array<i64: 1, 16, 16, 8>}, {pipeline_mode = #tpu.pipeline_mode<synchronous>, transform_indices = @transform_1, window_bounds = array<i64: 2, 8>}, {pipeline_mode = #tpu.pipeline_mode<synchronous>, transform_indices = @transform_2, window_bounds = array<i64: 8, 4>}, {transform_indices = @transform_3, window_bounds = array<i64: 1, 8, 8, 4>}]} {
    %c0 = arith.constant 0 : index
    %c0_0 = arith.constant 0 : index
    %0 = vector.load %arg3[%c0, %c0_0] : memref<2x8xf32, #tpu.memory_space<vmem>>, vector<1x8xf32>
    %1 = vector.shape_cast %0 : vector<1x8xf32> to vector<8xf32>
    %2 = vector.shape_cast %1 : vector<8xf32> to vector<1x1x8xf32>
    %c1 = arith.constant 1 : index
    %c0_1 = arith.constant 0 : index
    %3 = vector.load %arg3[%c1, %c0_1] : memref<2x8xf32, #tpu.memory_space<vmem>>, vector<1x8xf32>
    %4 = vector.shape_cast %3 : vector<1x8xf32> to vector<8xf32>
    %5 = vector.shape_cast %4 : vector<8xf32> to vector<1x1x8xf32>
    %c0_2 = arith.constant 0 : index
    %c0_3 = arith.constant 0 : index
    %c0_4 = arith.constant 0 : index
    %c0_5 = arith.constant 0 : index
    %6 = tpu.strided_load %arg2[%c0_2, %c0_3, %c0_4, %c0_5] {strides = array<i32: 1, 1, 2, 1>} : memref<1x16x16x8xf32, #tpu.memory_space<vmem>>, vector<1x16x8x8xf32>
    %7 = vector.shape_cast %6 : vector<1x16x8x8xf32> to vector<16x8x8xf32>
    %c0_6 = arith.constant 0 : index
    %c0_7 = arith.constant 0 : index
    %c1_8 = arith.constant 1 : index
    %c0_9 = arith.constant 0 : index
    %8 = tpu.strided_load %arg2[%c0_6, %c0_7, %c1_8, %c0_9] {strides = array<i32: 1, 1, 2, 1>} : memref<1x16x16x8xf32, #tpu.memory_space<vmem>>, vector<1x16x8x8xf32>
    %9 = vector.shape_cast %8 : vector<1x16x8x8xf32> to vector<16x8x8xf32>
    %10 = vector.broadcast %2 : vector<1x1x8xf32> to vector<16x8x8xf32>
    %11 = arith.mulf %7, %10 : vector<16x8x8xf32>
    %12 = vector.broadcast %5 : vector<1x1x8xf32> to vector<16x8x8xf32>
    %13 = arith.addf %11, %12 : vector<16x8x8xf32>
    %cst = arith.constant 0.000000e+00 : f32
    %14 = vector.broadcast %cst : f32 to vector<16x8x8xf32>
    %15 = arith.maximumf %13, %14 : vector<16x8x8xf32>
    %16 = vector.broadcast %2 : vector<1x1x8xf32> to vector<16x8x8xf32>
    %17 = arith.mulf %9, %16 : vector<16x8x8xf32>
    %18 = vector.broadcast %5 : vector<1x1x8xf32> to vector<16x8x8xf32>
    %19 = arith.addf %17, %18 : vector<16x8x8xf32>
    %cst_10 = arith.constant 0.000000e+00 : f32
    %20 = vector.broadcast %cst_10 : f32 to vector<16x8x8xf32>
    %21 = arith.maximumf %19, %20 : vector<16x8x8xf32>
    %22 = arith.addf %15, %21 : vector<16x8x8xf32>
    %23 = vector.shape_cast %22 : vector<16x8x8xf32> to vector<8x2x8x8xf32>
    %24 = vector.extract_strided_slice %23 {offsets = [0, 0, 0, 0], sizes = [8, 1, 8, 8], strides = [1, 1, 1, 1]} : vector<8x2x8x8xf32> to vector<8x1x8x8xf32>
    %25 = vector.shape_cast %24 : vector<8x1x8x8xf32> to vector<8x8x8xf32>
    %26 = vector.extract_strided_slice %23 {offsets = [0, 1, 0, 0], sizes = [8, 1, 8, 8], strides = [1, 1, 1, 1]} : vector<8x2x8x8xf32> to vector<8x1x8x8xf32>
    %27 = vector.shape_cast %26 : vector<8x1x8x8xf32> to vector<8x8x8xf32>
    %28 = arith.addf %25, %27 : vector<8x8x8xf32>
    %29 = vector.shape_cast %28 : vector<8x8x8xf32> to vector<64x8xf32>
    %c0_11 = arith.constant 0 : index
    %c0_12 = arith.constant 0 : index
    %30 = vector.load %arg4[%c0_11, %c0_12] : memref<8x4xf32, #tpu.memory_space<vmem>>, vector<8x4xf32>
    %cst_13 = arith.constant dense<0.000000e+00> : vector<64x4xf32>
    %31 = tpu.matmul %29, %30, %cst_13 {dimension_numbers = #tpu.dot_dimension_numbers<[1], [0], [0], [1], [0, 0, 1, 1], [], []>} : vector<64x8xf32>, vector<8x4xf32>, vector<64x4xf32> -> vector<64x4xf32>
    %32 = vector.shape_cast %31 : vector<64x4xf32> to vector<8x8x4xf32>
    %c0_14 = arith.constant 0 : index
    %c0_15 = arith.constant 0 : index
    %c0_16 = arith.constant 0 : index
    %c0_17 = arith.constant 0 : index
    %33 = vector.load %arg5[%c0_14, %c0_15, %c0_16, %c0_17] : memref<1x8x8x4xf32, #tpu.memory_space<vmem>>, vector<1x8x8x4xf32>
    %34 = vector.shape_cast %33 : vector<1x8x8x4xf32> to vector<8x8x4xf32>
    %35 = vector.shape_cast %32 : vector<8x8x4xf32> to vector<1x8x8x4xf32>
    tpu.vector_store %arg5[%c0_14, %c0_15, %c0_16, %c0_17], %35 {strides = array<i32>} : memref<1x8x8x4xf32, #tpu.memory_space<vmem>>, vector<1x8x8x4xf32>,
    return
  }
  func.func @transform_0(%arg0: i32, %arg1: i32) -> (i32, i32, i32, i32) {
    %c0_i32 = arith.constant 0 : i32
    %c0_i32_0 = arith.constant 0 : i32
    %c0_i32_1 = arith.constant 0 : i32
    return %arg0, %arg1, %c0_i32, %c0_i32_0 : i32, i32, i32, i32
  }
  func.func @transform_1(%arg0: i32, %arg1: i32) -> (i32, i32) {
    %c0_i32 = arith.constant 0 : i32
    %c0_i32_0 = arith.constant 0 : i32
    %c0_i32_1 = arith.constant 0 : i32
    return %c0_i32, %c0_i32_0 : i32, i32
  }
  func.func @transform_2(%arg0: i32, %arg1: i32) -> (i32, i32) {
    %c0_i32 = arith.constant 0 : i32
    %c0_i32_0 = arith.constant 0 : i32
    %c0_i32_1 = arith.constant 0 : i32
    return %c0_i32, %c0_i32_0 : i32, i32
  }
  func.func @transform_3(%arg0: i32, %arg1: i32) -> (i32, i32, i32, i32) {
    %c0_i32 = arith.constant 0 : i32
    %c0_i32_0 = arith.constant 0 : i32
    %c0_i32_1 = arith.constant 0 : i32
    return %arg0, %arg1, %c0_i32, %c0_i32_0 : i32, i32, i32, i32
  }
}

</mosaic_0001>

<bundles_post_ra>
// kernel: transition_block_nhwc.1
= control target key start
LH: loop header
LB: loop body
LE: loop exit
PB: predicated region body
PF: predicated region fallthrough
CT: control target
= control target key end

     0   :  { %8 = vsyncpa [#allocation3], 0  ;;  %s1433_s0 = inlined_call_operand.hbm [shape: f32[2,16,16,8], index: 0, kind: input, shape index: {}]   ;;  %s1434_s1 = inlined_call_operand.hbm [shape: f32[2,8], index: 1, kind: input, shape index: {}]   ;;  %s1435_s2 = inlined_call_operand.hbm [shape: f32[8,4], index: 2, kind: input, shape index: {}]   ;;  %s1436_s3 = inlined_call_operand.hbm [shape: f32[2,8,8,4], index: 3, kind: output, shape index: {}]  }
   0x1   :  { %10 = vsyncpa [#allocation3 + $0x1], 0 }
   0x2   :  { %11 = vsyncpa [#allocation6], 0 }
   0x3   :  { %12 = vsyncpa [#allocation4], 0 }
   0x4   :  { %14 = vsyncpa [#allocation4 + $0x1], 0  ;;  %s1066_s12 = smov 0   ;;  %s1068_s13 = smov 0  }
   0x5   :  { %s1070_s14 = smov 0   ;;  %s1072_s15 = smov 0  }
   0x6   :  { %s1074_s16 = smov 0   ;;  %s1076_s17 = smov 0  }
   0x7 LB: > { %s690_s18 = sadd.s32 4294967295, %s1036_s17   ;;  %s691_s19 = sadd.s32 4294967294, %s1036_s17   ;;  %s1036_s17 = sphi %s1076_s17, %s20_s17   ;;  %s1032_s16 = sphi %s1074_s16, %s1462_s16   ;;  %s1028_s15 = sphi %s1072_s15, %s1461_s15   ;;  %s1024_s14 = sphi %s1070_s14, %s1460_s14   ;;  %s1020_s13 = sphi %s1068_s13, %s1459_s13   ;;  %s1016_s12 = sphi %s1066_s12, %s1458_s12  }
   0x8   : > { %s41_s20 = sadd.s32 1, %s1024_s14  ;;  %p48_p0 = scmp.ne.s32.totalorder %s1024_s14, %s1020_s13 }
   0x9   : > { %p49_p1 = scmp.eq.s32.totalorder %s1036_s17, 0  ;;  %p54_p2 = scmp.ne.s32.totalorder %s1020_s13, %s1016_s12 }
   0xa   : > { %p1104_p3 = scmp.eq.s32.totalorder %s690_s18, 0  ;;  %p122_p4 = scmp.eq.s32.totalorder %s690_s18, 1 }
   0xb   : > { %p1108_p5 = por %p49_p1, %p48_p0  ;;  %p128_p6 = scmp.eq.s32.totalorder %s691_s19, 1 }
   0xc   : > { %s1443_s21 = scalar_select %p1104_p3, 1, 0 }
   0xd   : > { %p1114_p7 = por %p1104_p3, %p54_p2  ;;  %p1118_p8 = por %p122_p4, %p48_p0 }
   0xe   : > { %p1122_p9 = por %p128_p6, %p54_p2  ;;  %p692_p10 = scmp.ge.s32.totalorder %s1036_s17, 1 }
   0xf   : > { %s1445_s23 = scalar_select %p1114_p7, 1, 0 }
  0x10   : > { %s1446_s24 = scalar_select %p1118_p8, 1, 0 }
  0x11   : > { %s1447_s25 = scalar_select %p1122_p9, 1, 0 }
  0x12   : > { %p135_p11 = scmp.lt.s32.totalorder %s1036_s17, 3  ;;  %s1038_s27 = smov [#allocation5]  }
  0x13   : > { %s148_s28 = sshll.u32 %s1038_s27, 4  ;;  %p806_p1 = scmp.lt.s32.totalorder %s1036_s17, 2  ;;  %s149_s28 = int_to_ptr.vmem [resolvable:$true] %s148_s28 }
  0x14   : > { %p1129_p13 = pnand %p692_p10, %p135_p11  ;;  %s1039_s30 = smov [#allocation7]  }
  0x15   : > { %p1138_p4 = pnand %p806_p1, %p1108_p5  ;;  %s159_s4 = sshll.u32 %s1039_s30, 4  ;;  %s1148_s4 = int_to_ptr.vmem [resolvable:$true] %s159_s4 }
  0x16   : > { %s1448_s26 = scalar_select %p1129_p13, 1, 0 }
  0x17   : > { %p789_p0 = pneg %p1129_p13  ;;  %s864_s8 = scalar_lea.hbm %s1434_s1, 32 }
  0x18   : > { %s1449_s29 = scalar_select %p1138_p4, 1, 0 }
  0x19   : > { %p1144_p2 = pnand %p789_p0, %p1104_p3  ;;  %p865_p5 = scmp.ne.s32.totalorder %s1434_s1, %s864_s8 }
  0x1a   : > { %p871_p1 = scmp.lt.u32.totalorder %s864_s8, %s1434_s1 }
  0x1b   : > { %p866_p6 = pneg %p1144_p2 }
  0x1d   : > { %p867_p10 = pnand %p866_p6, %p865_p5 }
  0x1f   : > { %p868_p11 = pneg %p867_p10 }
  0x21   : > { %p873_p0 = pnand %p871_p1, %p868_p11 }
  0x23   : > { %876 = shalt.err (!%p873_p0)
}
  0x24   : > { %s877_s19 = scalar_lea.vmem %s149_s28, 32  ;;  %p885_p3 = scmp.lt.s32.totalorder %s149_s28, %s149_s28 }
  0x25   : > { %p878_p12 = scmp.ne.s32.totalorder %s149_s28, %s877_s19  ;;  %p886_p7 = scmp.lt.s32.totalorder %s877_s19, %s877_s19 }
  0x27   : > { %p880_p9 = pnand %p878_p12, %p866_p6  ;;  %p887_p13 = por %p886_p7, %p885_p3 }
  0x29   : > { %p881_p8 = pneg %p880_p9 }
  0x2b   : > { %p888_p4 = pnand %p887_p13, %p881_p8 }
  0x2d   : > { %891 = shalt.err (!%p888_p4)
}
  0x2e   : > { %792 = dma.hbm_to_vmem [thread:$0]  (!%p1144_p2), %s1434_s1, 32, %s149_s28, [#allocation6]  }
  0x2f   : > { %s892_s7 = scalar_lea.hbm %s1435_s2, 128 }
  0x30   : > { %p893_p9 = scmp.ne.s32.totalorder %s1435_s2, %s892_s7  ;;  %p899_p8 = scmp.lt.u32.totalorder %s892_s7, %s1435_s2 }
  0x32   : > { %p895_p3 = pnand %p893_p9, %p866_p6 }
  0x34   : > { %p896_p7 = pneg %p895_p3 }
  0x36   : > { %p901_p12 = pnand %p899_p8, %p896_p7 }
  0x38   : > { %904 = shalt.err (!%p901_p12)
}
  0x39   : > { %s905_s28 = scalar_lea.vmem %s1148_s4, 128  ;;  %p913_p10 = scmp.lt.s32.totalorder %s1148_s4, %s1148_s4 }
  0x3a   : > { %p906_p13 = scmp.ne.s32.totalorder %s1148_s4, %s905_s28  ;;  %p914_p11 = scmp.lt.s32.totalorder %s905_s28, %s905_s28 }
  0x3c   : > { %p908_p4 = pnand %p906_p13, %p866_p6  ;;  %p915_p1 = por %p914_p11, %p913_p10 }
  0x3e   : > { %p909_p5 = pneg %p908_p4 }
  0x40   : > { %p916_p0 = pnand %p915_p1, %p909_p5 }
  0x42   : > { %919 = shalt.err (!%p916_p0)
}
  0x43   : > { %795 = dma.hbm_to_vmem [thread:$0]  (!%p1144_p2), %s1435_s2, 128, %s1148_s4, [#allocation6]  }
  0x44   : > { %s32_s22 = sadd.s32 1, %s1032_s16  ;;  %s170_s27 = sand.u32 1, %s1024_s14  }
  0x45   : > { %p34_p6 = scmp.ge.s32.totalorder %s32_s22, 2  ;;  %s696_s30 = sshll.u32 %s170_s27, 8 }
  0x46   : > { %s750_s6 = sshll.u32 %s1032_s16, 12  ;;  %s174_s4 = scalar_lea.vmem [#allocation2], %s696_s30 }
  0x47   : > { %s1464_s22 = smov (%p34_p6, %s32_s22), 0  ;;  %s1205_s8 = scalar_lea.hbm %s1433_s0, %s750_s6 }
  0x48   : > { %s36_s9 = ssub.s32 %s1032_s16, %s1464_s22  ;;  %s184_s10 = sshll.u32 %s174_s4, 4  ;;  %s1209_s10 = int_to_ptr.vmem [resolvable:$true] %s184_s10 }
  0x49   : > { %p39_p2 = scmp.eq.s32.totalorder %s36_s9, 0  ;;  %s1216_s28 = scalar_lea.sflag [#allocation3], %s170_s27 }
  0x4a   : > { %s920_s18 = scalar_lea.hbm %s1205_s8, 4096  ;;  %p1451_p3 = scmp.ne.s32.totalorder %s1449_s29, 0 }
  0x4b   : > { %s1214_s11 = scalar_select %p39_p2, %s1024_s14, %s41_s20  }
  0x4c   : > { %p921_p9 = scmp.ne.s32.totalorder %s1205_s8, %s920_s18  ;;  %p922_p7 = pneg %p1451_p3 }
  0x4d   : > { %s925_s30 = scalar_lea.hbm %s1433_s0, 8192  ;;  %p926_p13 = scmp.lt.u32.totalorder %s1205_s8, %s1433_s0 }
  0x4e   : > { %p923_p8 = pnand %p922_p7, %p921_p9  ;;  %p927_p4 = scmp.lt.u32.totalorder %s925_s30, %s920_s18 }
  0x4f   : > { %p929_p10 = scmp.lt.u32.totalorder %s920_s18, %s1205_s8 }
  0x50   : > { %p924_p12 = pneg %p923_p8  ;;  %p928_p5 = por %p927_p4, %p926_p13 }
  0x52   : > { %p930_p11 = por %p929_p10, %p928_p5 }
  0x54   : > { %p931_p1 = pnand %p930_p11, %p924_p12 }
  0x56   : > { %934 = shalt.err (!%p931_p1)
}
  0x57   : > { %s935_s20 = scalar_lea.vmem %s1209_s10, 4096  ;;  %s1040_s27 = smov [#allocation2]  }
  0x58   : > { %p936_p0 = scmp.ne.s32.totalorder %s1209_s10, %s935_s20  ;;  %s940_s9 = sshll.u32 %s1040_s27, 4  ;;  %s941_s9 = int_to_ptr.vmem [resolvable:$false] %s940_s9 }
  0x59   : > { %s942_s4 = scalar_lea.vmem %s941_s9, 8192  ;;  %p943_p9 = scmp.lt.s32.totalorder %s1209_s10, %s941_s9 }
  0x5a   : > { %p938_p6 = pnand %p936_p0, %p922_p7  ;;  %p944_p8 = scmp.lt.s32.totalorder %s942_s4, %s935_s20 }
  0x5c   : > { %p939_p2 = pneg %p938_p6  ;;  %p945_p13 = por %p944_p8, %p943_p9 }
  0x5e   : > { %p946_p4 = pnand %p945_p13, %p939_p2 }
  0x60   : > { %949 = shalt.err (!%p946_p4)
}
  0x61   : > { %s1041_s18 = smov 128   ;;  %s1042_s19 = smov 8  }
  0x62   : > { %799 = dma.hbm_to_vmem [thread:$0]  (!%p1451_p3), %s1205_s8, 4096, %s1209_s10, %s1216_s28, %s1041_s18, %s1041_s18, %s1042_s19  }
  0x63   : > { %p1452_p7 = scmp.ne.s32.totalorder %s1448_s26, 0 }
  0x64   : > { %s1247_s6 = sand.u32 (!%p1452_p7), 1, %s1020_s13   ;;  %p1453_p12 = scmp.ne.s32.totalorder (!%p1452_p7), %s1445_s23, 0 }
  0x65   : > { %196 = sbr.rel (%p1452_p7) target bundleno = 378 (0x17a), region = 32  ;;  %s700_s30 = sshll.u32 (!%p1452_p7), %s1247_s6, 8 }
  0x66   : > { %s199_s5 = scalar_lea.sflag (!%p1452_p7), [#allocation3], %s1247_s6  ;;  %s1251_s7 = scalar_lea.vmem (!%p1452_p7), [#allocation2], %s700_s30 }
  0x6c   : > { %1003 = dma.done.wait (%p1453_p12), %s199_s5, 4096  }
  0x6d   : > { %1005 = vsyncadd (%p1453_p12), %s199_s5, 4294963200  ;;  %p1454_p3 = scmp.ne.s32.totalorder %s1443_s21, 0 }
  0x6f   : > { %1007 = dma.done.wait (%p1454_p3), [#allocation6], 160  }
  0x70   : > { %1009 = vsyncadd (%p1454_p3), [#allocation6], 4294967136  ;;  %v428_v0 = vld [vmem:[#allocation7] sm:$0xff]  ;;  %v1261_v1 = vld [vmem:[#allocation5] ss:$0 sm:$0xff]  ;;  %vm429_vm0 = vcmask 64512  }
  0x71   : > { %v1263_v2 = vld [vmem:[#allocation5 + $0x1] ss:$0 sm:$0xff]  ;;  %761 = vmatprep.subr.mxu0 %v428_v0  ;;  %775 = vmatprep.subr.mxu1 %v428_v0  ;;  %v237_v3 = vld [vmem:[%s1251_s7] ss:$2 sm:$0xff]  ;;  %v704_v4 = vld [vmem:[%s1251_s7 + $0x10] ss:$2 sm:$0xff] }
  0x72   : > { %v719_v5 = vld [vmem:[%s1251_s7 + $0x1] ss:$2 sm:$0xff]  ;;  %762 = vmatpush3.msra.mxu0 %v428_v0  ;;  %776 = vmatpush3.msra.mxu1 %v428_v0  ;;  %v720_v6 = vld [vmem:[%s1251_s7 + $0x11] ss:$2 sm:$0xff]  ;;  %v304_v7 = vmul.f32 %v1261_v1, %v237_v3  ;;  %v305_v8 = vmul.f32 %v1261_v1, %v704_v4  ;;  %v711_v10 = vld [vmem:[%s1251_s7 + $0x80] ss:$2 sm:$0xff] }
  0x73   : > { %v356_v9 = vmul.f32 %v1261_v1, %v719_v5  ;;  %v712_v11 = vld [vmem:[%s1251_s7 + $0x90] ss:$2 sm:$0xff]  ;;  %v357_v12 = vmul.f32 %v1261_v1, %v720_v6  ;;  %v727_v13 = vld [vmem:[%s1251_s7 + $0x81] ss:$2 sm:$0xff]  ;;  %v728_v14 = vld [vmem:[%s1251_s7 + $0x91] ss:$2 sm:$0xff]  ;;  %v312_v15 = vmul.f32 %v1261_v1, %v711_v10 }
  0x74   : > { %v313_v16 = vmul.f32 %v1261_v1, %v712_v11  ;;  %v324_v17 = vadd.f32 %v1263_v2, %v304_v7  ;;  %v325_v18 = vadd.f32 %v1263_v2, %v305_v8  ;;  %v364_v20 = vmul.f32 %v1261_v1, %v727_v13  ;;  %v705_v25 = vld [vmem:[%s1251_s7 + $0x20] ss:$2 sm:$0xff]  ;;  %v706_v26 = vld [vmem:[%s1251_s7 + $0x30] ss:$2 sm:$0xff]  ;;  %v721_v27 = vld [vmem:[%s1251_s7 + $0x21] ss:$2 sm:$0xff] }
  0x75   : > { %v372_v19 = vadd.f32 %v1263_v2, %v356_v9  ;;  %v373_v21 = vadd.f32 %v1263_v2, %v357_v12  ;;  %v332_v22 = vadd.f32 %v1263_v2, %v312_v15  ;;  %v365_v24 = vmul.f32 %v1261_v1, %v728_v14  ;;  %v722_v32 = vld [vmem:[%s1251_s7 + $0x31] ss:$2 sm:$0xff]  ;;  %v713_v37 = vld [vmem:[%s1251_s7 + $0xa0] ss:$2 sm:$0xff]  ;;  %v714_v46 = vld [vmem:[%s1251_s7 + $0xb0] ss:$2 sm:$0xff] }
  0x76   : > { %v333_v23 = vadd.f32 %v1263_v2, %v313_v16  ;;  %v340_v28 = vmax.f32 %v324_v17, 0.0  ;;  %v341_v29 = vmax.f32 %v325_v18, 0.0  ;;  %v380_v31 = vadd.f32 %v1263_v2, %v364_v20  ;;  %v729_v50 = vld [vmem:[%s1251_s7 + $0xa1] ss:$2 sm:$0xff]  ;;  %v730_v56 = vld [vmem:[%s1251_s7 + $0xb1] ss:$2 sm:$0xff] }
  0x77   : > { %v388_v30 = vmax.f32 %v372_v19, 0.0  ;;  %v389_v33 = vmax.f32 %v373_v21, 0.0  ;;  %v348_v34 = vmax.f32 %v332_v22, 0.0  ;;  %v381_v36 = vadd.f32 %v1263_v2, %v365_v24  ;;  %v707_v57 = vld [vmem:[%s1251_s7 + $0x40] ss:$2 sm:$0xff]  ;;  %s703_s21 = sshll.u32 %s1247_s6, 6 }
  0x78   : > { %v349_v35 = vmax.f32 %v333_v23, 0.0  ;;  %v396_v39 = vmax.f32 %v380_v31, 0.0  ;;  %v306_v40 = vmul.f32 %v1261_v1, %v705_v25  ;;  %v307_v41 = vmul.f32 %v1261_v1, %v706_v26  ;;  %v708_v62 = vld [vmem:[%s1251_s7 + $0x50] ss:$2 sm:$0xff]  ;;  %v723_v5 = vld [vmem:[%s1251_s7 + $0x41] ss:$2 sm:$0xff] }
  0x79   : > { %v404_v38 = vadd.f32 %v388_v30, %v340_v28  ;;  %v405_v42 = vadd.f32 %v389_v33, %v341_v29  ;;  %v397_v43 = vmax.f32 %v381_v36, 0.0  ;;  %v358_v44 = vmul.f32 %v1261_v1, %v721_v27  ;;  %v724_v9 = vld [vmem:[%s1251_s7 + $0x51] ss:$2 sm:$0xff]  ;;  %v715_v15 = vld [vmem:[%s1251_s7 + $0xc0] ss:$2 sm:$0xff]  ;;  %s232_s23 = scalar_lea.vmem [#allocation8], %s703_s21 }
  0x7a   : > { %v359_v45 = vmul.f32 %v1261_v1, %v722_v32  ;;  %v412_v47 = vadd.f32 %v396_v39, %v348_v34  ;;  %v326_v48 = vadd.f32 %v1263_v2, %v306_v40  ;;  %v327_v49 = vadd.f32 %v1263_v2, %v307_v41  ;;  %v716_v20 = vld [vmem:[%s1251_s7 + $0xd0] ss:$2 sm:$0xff]  ;;  %v731_v25 = vld [vmem:[%s1251_s7 + $0xc1] ss:$2 sm:$0xff]  ;;  %v732_v29 = vld [vmem:[%s1251_s7 + $0xd1] ss:$2 sm:$0xff] }
  0x7b   : > { %v314_v51 = vmul.f32 %v1261_v1, %v713_v37  ;;  %v420_v52 = vadd.f32 %v405_v42, %v404_v38  ;;  %v413_v53 = vadd.f32 %v397_v43, %v349_v35  ;;  %v374_v54 = vadd.f32 %v1263_v2, %v358_v44  ;;  %v709_v31 = vld [vmem:[%s1251_s7 + $0x60] ss:$2 sm:$0xff]  ;;  %v710_v40 = vld [vmem:[%s1251_s7 + $0x70] ss:$2 sm:$0xff]  ;;  %v725_v44 = vld [vmem:[%s1251_s7 + $0x61] ss:$2 sm:$0xff] }
  0x7c   : > { %v375_v55 = vadd.f32 %v1263_v2, %v359_v45  ;;  %v342_v58 = vmax.f32 %v326_v48, 0.0  ;;  %v343_v59 = vmax.f32 %v327_v49, 0.0  ;;  %v315_v60 = vmul.f32 %v1261_v1, %v714_v46  ;;  %v726_v45 = vld [vmem:[%s1251_s7 + $0x71] ss:$2 sm:$0xff]  ;;  %s584_s26 = sshll.u32 %s232_s23, 4  ;;  %s751_s29 = sshll.u32 %s1028_s15, 10  ;;  %s1376_s26 = int_to_ptr.vmem [resolvable:$true] %s584_s26 }
  0x7d   : > { %v334_v61 = vadd.f32 %v1263_v2, %v314_v51  ;;  %763 = vmatprep.mubr.msk.f32.mxu0 %vm429_vm0, %v420_v52  ;;  %v424_v63 = vadd.f32 %v413_v53, %v412_v47  ;;  %v390_v0 = vmax.f32 %v374_v54, 0.0  ;;  %v366_v4 = vmul.f32 %v1261_v1, %v729_v50  ;;  %v717_v51 = vld [vmem:[%s1251_s7 + $0xe0] ss:$2 sm:$0xff]  ;;  %s1382_s28 = scalar_lea.hbm %s1436_s3, %s751_s29  ;;  %s569_s15 = scalar_lea.sflag [#allocation4], %s1247_s6 }
  0x7e   : > { %v391_v3 = vmax.f32 %v375_v55, 0.0  ;;  %v335_v6 = vadd.f32 %v1263_v2, %v315_v60  ;;  %v367_v8 = vmul.f32 %v1261_v1, %v730_v56  ;;  %v308_v10 = vmul.f32 %v1261_v1, %v707_v57  ;;  %v718_v60 = vld [vmem:[%s1251_s7 + $0xf0] ss:$2 sm:$0xff]  ;;  %s950_s20 = scalar_lea.vmem %s1376_s26, 1024  ;;  %p1455_p10 = scmp.ne.s32.totalorder %s1446_s24, 0 }
  0x7f   : > { %v350_v7 = vmax.f32 %v334_v61, 0.0  ;;  %769 = vmatprep.mubr.msk.f32.mxu1 %vm429_vm0, %v424_v63  ;;  %v406_v11 = vadd.f32 %v390_v0, %v342_v58  ;;  %v382_v13 = vadd.f32 %v1263_v2, %v366_v4  ;;  %v309_v14 = vmul.f32 %v1261_v1, %v708_v62  ;;  %v733_v0 = vld [vmem:[%s1251_s7 + $0xe1] ss:$2 sm:$0xff]  ;;  %p951_p5 = scmp.ne.s32.totalorder %s1376_s26, %s950_s20  ;;  %s1043_s27 = smov [#allocation8]  }
  0x80   : > { %v407_v12 = vadd.f32 %v391_v3, %v343_v59  ;;  %v351_v16 = vmax.f32 %v335_v6, 0.0  ;;  %v383_v17 = vadd.f32 %v1263_v2, %v367_v8  ;;  %v328_v18 = vadd.f32 %v1263_v2, %v308_v10  ;;  %v734_v3 = vld [vmem:[%s1251_s7 + $0xf1] ss:$2 sm:$0xff]  ;;  %s954_s9 = sshll.u32 %s1043_s27, 4  ;;  %s955_s9 = int_to_ptr.vmem [resolvable:$false] %s954_s9 }
  0x81   : > { %v360_v19 = vmul.f32 %v1261_v1, %v723_v5  ;;  %v398_v22 = vmax.f32 %v382_v13, 0.0  ;;  %v329_v23 = vadd.f32 %v1263_v2, %v309_v14  ;;  %v361_v24 = vmul.f32 %v1261_v1, %v724_v9  ;;  %p952_p11 = pnand %p951_p5, %p1455_p10  ;;  %s956_s4 = scalar_lea.vmem %s955_s9, 2048 }
  0x82   : > { %v421_v21 = vadd.f32 %v407_v12, %v406_v11  ;;  %v399_v26 = vmax.f32 %v383_v17, 0.0  ;;  %v344_v27 = vmax.f32 %v328_v18, 0.0  ;;  %v316_v30 = vmul.f32 %v1261_v1, %v715_v15  ;;  %p957_p0 = scmp.lt.s32.totalorder %s1376_s26, %s955_s9  ;;  %p958_p6 = scmp.lt.s32.totalorder %s956_s4, %s950_s20 }
  0x83   : > { %v376_v28 = vadd.f32 %v1263_v2, %v360_v19  ;;  %v414_v32 = vadd.f32 %v398_v22, %v350_v7  ;;  %v345_v33 = vmax.f32 %v329_v23, 0.0  ;;  %v377_v34 = vadd.f32 %v1263_v2, %v361_v24  ;;  %p953_p1 = pneg %p952_p11 }
  0x84   : > { %764 = vmatmul.mubr.msk.f32.vlgmr.msra.gmra.mrb[0].mxu0 %vm429_vm0, %v421_v21  ;;  %v317_v35 = vmul.f32 %v1261_v1, %v716_v20  ;;  %v415_v36 = vadd.f32 %v399_v26, %v351_v16  ;;  %v336_v38 = vadd.f32 %v1263_v2, %v316_v30  ;;  %v368_v39 = vmul.f32 %v1261_v1, %v731_v25  ;;  %p959_p2 = por %p958_p6, %p957_p0 }
  0x85   : > { %v392_v37 = vmax.f32 %v376_v28, 0.0  ;;  %v393_v41 = vmax.f32 %v377_v34, 0.0  ;;  %v369_v43 = vmul.f32 %v1261_v1, %v732_v29  ;;  %v310_v46 = vmul.f32 %v1261_v1, %v709_v31 }
  0x86   : > { %v337_v42 = vadd.f32 %v1263_v2, %v317_v35  ;;  %v425_v47 = vadd.f32 %v415_v36, %v414_v32  ;;  %v352_v49 = vmax.f32 %v336_v38, 0.0  ;;  %v384_v50 = vadd.f32 %v1263_v2, %v368_v39  ;;  %p960_p9 = pnand %p959_p2, %p953_p1 }
  0x87   : > { %v408_v48 = vadd.f32 %v392_v37, %v344_v27  ;;  %v409_v52 = vadd.f32 %v393_v41, %v345_v33  ;;  %v385_v54 = vadd.f32 %v1263_v2, %v369_v43  ;;  %v311_v55 = vmul.f32 %v1261_v1, %v710_v40 }
  0x88   : > { %v353_v53 = vmax.f32 %v337_v42, 0.0  ;;  %770 = vmatmul.mubr.msk.f32.vlgmr.msra.gmra.mrb[0].mxu1 %vm429_vm0, %v425_v47  ;;  %v400_v56 = vmax.f32 %v384_v50, 0.0  ;;  %v330_v57 = vadd.f32 %v1263_v2, %v310_v46  ;;  %v362_v58 = vmul.f32 %v1261_v1, %v725_v44 }
  0x89   : > { %v363_v59 = vmul.f32 %v1261_v1, %v726_v45  ;;  %v422_v61 = vadd.f32 %v409_v52, %v408_v48  ;;  %v401_v62 = vmax.f32 %v385_v54, 0.0  ;;  %v331_v63 = vadd.f32 %v1263_v2, %v311_v55 }
  0x8a   : > { %v318_v4 = vmul.f32 %v1261_v1, %v717_v51  ;;  %v416_v5 = vadd.f32 %v400_v56, %v352_v49  ;;  %v346_v6 = vmax.f32 %v330_v57, 0.0  ;;  %v378_v7 = vadd.f32 %v1263_v2, %v362_v58 }
  0x8b   : > { %v379_v8 = vadd.f32 %v1263_v2, %v363_v59  ;;  %766 = vmatprep.mubr.msk.f32.mxu0 %vm429_vm0, %v422_v61  ;;  %v417_v9 = vadd.f32 %v401_v62, %v353_v53  ;;  %v347_v10 = vmax.f32 %v331_v63, 0.0  ;;  %v319_v11 = vmul.f32 %v1261_v1, %v718_v60 }
  0x8c   : > { %v338_v12 = vadd.f32 %v1263_v2, %v318_v4  ;;  %v394_v13 = vmax.f32 %v378_v7, 0.0  ;;  %v370_v15 = vmul.f32 %v1261_v1, %v733_v0  ;;  %v371_v16 = vmul.f32 %v1261_v1, %v734_v3 }
  0x8d   : > { %v395_v14 = vmax.f32 %v379_v8, 0.0  ;;  %v426_v17 = vadd.f32 %v417_v9, %v416_v5  ;;  %v339_v18 = vadd.f32 %v1263_v2, %v319_v11  ;;  %vm559_vm1 = vcmask 31744  }
  0x8e   : > { %v354_v19 = vmax.f32 %v338_v12, 0.0  ;;  %v410_v20 = vadd.f32 %v394_v13, %v346_v6  ;;  %v386_v22 = vadd.f32 %v1263_v2, %v370_v15  ;;  %v387_v23 = vadd.f32 %v1263_v2, %v371_v16 }
  0x8f   : > { %v411_v21 = vadd.f32 %v395_v14, %v347_v10  ;;  %772 = vmatprep.mubr.msk.f32.mxu1 %vm429_vm0, %v426_v17  ;;  %v355_v24 = vmax.f32 %v339_v18, 0.0 }
  0x90   : > { %v402_v26 = vmax.f32 %v386_v22, 0.0  ;;  %v403_v27 = vmax.f32 %v387_v23, 0.0 }
  0x91   : > { %v423_v25 = vadd.f32 %v411_v21, %v410_v20 }
  0x92   : > { %v418_v1 = vadd.f32 %v402_v26, %v354_v19  ;;  %v419_v28 = vadd.f32 %v403_v27, %v355_v24 }
  0x93   : > { %767 = vmatmul.mubr.msk.f32.gmra.mrb[2].mxu0 %vm429_vm0, %v423_v25 }
  0x94   : > { %v427_v29 = vadd.f32 %v419_v28, %v418_v1 }
  0x96   : > { %773 = vmatmul.mubr.msk.f32.gmra.mrb[2].mxu1 %vm429_vm0, %v427_v29 }
 0x157   : > { %v765_v30 = vpop.f32.mrb[0].mxu0 }
 0x158   : > { %561 = vst.msk [vmem:[%s232_s23 + $0x8] sm:$0xff] %vm559_vm1, %v765_v30  ;;  %v520_v2 = vpop.f32.mrb[1].mxu0 }
 0x159   : > { %560 = vst.msk [vmem:[%s232_s23] sm:$0xff] %vm559_vm1, %v520_v2 }
 0x15b   : > { %v771_v31 = vpop.f32.mrb[0].mxu1 }
 0x15c   : > { %565 = vst.msk [vmem:[%s232_s23 + $0x28] sm:$0xff] %vm559_vm1, %v771_v31  ;;  %v540_v32 = vpop.f32.mrb[1].mxu1 }
 0x15d   : > { %564 = vst.msk [vmem:[%s232_s23 + $0x20] sm:$0xff] %vm559_vm1, %v540_v32 }
 0x166   : > { %v768_v33 = vpop.f32.mrb[2].mxu0 }
 0x167   : > { %563 = vst.msk [vmem:[%s232_s23 + $0x18] sm:$0xff] %vm559_vm1, %v768_v33  ;;  %v530_v34 = vpop.f32.mrb[3].mxu0 }
 0x168   : > { %562 = vst.msk [vmem:[%s232_s23 + $0x10] sm:$0xff] %vm559_vm1, %v530_v34 }
 0x169   : > { %v774_v35 = vpop.f32.mrb[2].mxu1 }
 0x16a   : > { %567 = vst.msk [vmem:[%s232_s23 + $0x38] sm:$0xff] %vm559_vm1, %v774_v35  ;;  %v550_v36 = vpop.f32.mrb[3].mxu1 }
 0x16b   : > { %566 = vst.msk [vmem:[%s232_s23 + $0x30] sm:$0xff] %vm559_vm1, %v550_v36 }
 0x16c   : > { %963 = shalt.err (!%p960_p9)
}
 0x16d   : > { %s964_s18 = scalar_lea.hbm %s1382_s28, 1024  ;;  %s968_s5 = scalar_lea.hbm %s1436_s3, 2048 }
 0x16e   : > { %p965_p8 = scmp.ne.s32.totalorder %s1382_s28, %s964_s18  ;;  %p969_p7 = scmp.lt.u32.totalorder %s1382_s28, %s1436_s3 }
 0x16f   : > { %p970_p12 = scmp.lt.u32.totalorder %s968_s5, %s964_s18  ;;  %p972_p5 = scmp.lt.u32.totalorder %s964_s18, %s1382_s28 }
 0x170   : > { %p966_p13 = pnand %p965_p8, %p1455_p10 }
 0x171   : > { %p971_p3 = por %p970_p12, %p969_p7 }
 0x172   : > { %p967_p4 = pneg %p966_p13 }
 0x173   : > { %p973_p11 = por %p972_p5, %p971_p3 }
 0x175   : > { %p974_p1 = pnand %p973_p11, %p967_p4 }
 0x177   : > { %977 = shalt.err (!%p974_p1)
}
 0x178   : > { %s1044_s23 = smov 128   ;;  %s1045_s29 = smov 8  }
 0x179   : > { %787 = dma.vmem_to_hbm [thread:$0]  (%p1455_p10), %s1376_s26, 1024, %s1382_s28, %s569_s15, %s1044_s23, %s1044_s23, %s1045_s29  }
 0x17a PF: > { %s599_s8 = sand.u32 1, %s1016_s12   ;;  %p1456_p0 = scmp.ne.s32.totalorder %s1447_s25, 0 }
 0x17b   : > { %p1457_p6 = scmp.ge.s32.totalorder %s1036_s17, 2  ;;  %s600_s10 = scalar_lea.sflag [#allocation4], %s599_s8 }
 0x17d   : > { %p801_p2 = pnand %p1457_p6, %p1456_p0 }
 0x17f   : > { %1011 = dma.done.wait (!%p801_p2), %s600_s10, 1024  }
 0x180   : > { %1013 = vsyncadd (!%p801_p2), %s600_s10, 4294966272  ;;  %s20_s17 = sadd.s32 1, %s1036_s17   ;;  %s1458_s12 = smov %s1020_s13 }
 0x181   : > { %p17_p9 = scmp.ge.s32.totalorder %s20_s17, 4   ;;  %s1459_s13 = smov %s1024_s14 }
 0x182   : > { %s1460_s14 = smov %s1214_s11  ;;  %s1461_s15 = smov %s1032_s16 }
 0x183   : > { %s1462_s16 = smov %s1464_s22  ;;  %19 = sbr.rel (!%p17_p9) target bundleno = 7 (0x7), region = 116 }
 0x18a   :  { %605 = vsyncpa [#allocation3], 1 }
 0x18b   :  { %607 = vsyncpa [#allocation3 + $0x1], 1 }
 0x18c   :  { %608 = vsyncpa [#allocation6], 1 }
 0x18d   :  { %609 = vsyncpa [#allocation4], 1 }
 0x18e   :  { %611 = vsyncpa [#allocation4 + $0x1], 1 }

</bundles_post_ra>
